<compile_context>
chip_gen: v6e
topology: v6e:2x2x1
jax: 0.10.0
libtpu: 0.0.40
codegen_flags: <defaults>
</compile_context>

<pallas_src>
import functools

import jax
import jax.numpy as jnp
from jax import lax
from jax.experimental import pallas as pl
from jax.experimental.pallas import tpu as pltpu

LN_EPS = 1e-5  # nn.LayerNorm default


def _layernorm(x, gamma, beta):
    # One-pass statistics: mean and E[x^2]; var = E[x^2] - mean^2 (single reduction pass).
    mean = jnp.mean(x, axis=-1, keepdims=True)
    msq = jnp.mean(x * x, axis=-1, keepdims=True)
    var = jnp.maximum(msq - mean * mean, 0.0)
    return (x - mean) * lax.rsqrt(var + LN_EPS) * gamma + beta


def encoder_kernel(x_ref, a_ref, bmix_ref, wc_ref,
                   g1_ref, be1_ref, w1T_ref, b1_ref, w2T_ref, b2_ref,
                   g2_ref, be2_ref, out_ref, *, tb, L):
    cd = wc_ref.dtype                     # matmul compute dtype (bf16 or f32)
    x = x_ref[...]                        # (tb*L, D) float32
    D = x.shape[-1]

    # ---- fused v_proj + out_proj weight path: values = x @ (Wv^T Wo^T) ----
    values = jnp.dot(x.astype(cd), wc_ref[...], preferred_element_type=jnp.float32)

    # ---- token mixing, batched over tb: new_x[b] = A @ values[b] + b_mix ----
    values3 = values.reshape(tb, L, D).astype(cd)          # cast ONCE before the mix
    a_b = jnp.broadcast_to(a_ref[...], (tb, L, L))         # A is tiny; broadcast is cheap
    mixed3 = jnp.einsum("bts,bsd->btd", a_b, values3,
                        preferred_element_type=jnp.float32)
    new_x = (mixed3 + bmix_ref[...][None]).reshape(tb * L, D)

    # ---- residual + LayerNorm1 (f32) ----
    x1 = _layernorm(x + new_x, g1_ref[...], be1_ref[...])

    # ---- FFN: Conv1d(k=1) -> relu -> Conv1d(k=1), flattened over tokens ----
    y = jnp.dot(x1.astype(cd), w1T_ref[...],
                preferred_element_type=jnp.float32) + b1_ref[...]
    y = jnp.maximum(y, 0.0)
    y = jnp.dot(y.astype(cd), w2T_ref[...],
                preferred_element_type=jnp.float32) + b2_ref[...]

    # ---- residual + LayerNorm2 (f32) ----
    out_ref[...] = _layernorm(x1 + y, g2_ref[...], be2_ref[...]).astype(out_ref.dtype)


def _choose_tb(B, L, D, d_ff, *, target_rows=1024, vmem_budget_bytes=24 << 20):
    """Pick batch-elements-per-grid-step.

    Targets tb*L in the ~512-1024 row range (512-1024-row tiles reach ~85% of HBM
    roofline vs ~29% at 128 rows), capped by an activation budget that leaves room
    for weights + double-buffered in/out blocks on the smallest-VMEM generation
    (v7x: 64 MiB/TC).  B need NOT be divisible by tb: the wrapper zero-pads the tail.
    """
    bytes_per_row = (9 * D + 2 * d_ff) * 4            # f32 intermediates + 2x in/out blocks
    cap_rows = max(L, vmem_budget_bytes // max(bytes_per_row, 1))
    rows = max(L, min(target_rows, cap_rows))
    return max(1, min(B, rows // L))


def _vmem_limit_bytes(rows, D, d_ff, weight_bytes):
    block_bytes = rows * D * 4
    act_bytes = rows * (9 * D + 2 * d_ff) * 4
    need = 2 * weight_bytes + 4 * block_bytes + act_bytes + (4 << 20)
    return int(min(max(need, 32 << 20), 64 << 20))


def _build_call(*, rows, n_rows_pad, D, d_ff, L, tb, vmem_limit, single_buffer_weights):
    steps = n_rows_pad // rows

    def const_spec(shape):
        n = len(shape)
        if single_buffer_weights:
            # Constant-index inputs never change across grid steps -> one buffer is enough.
            return pl.BlockSpec(shape, lambda i, n=n: (0,) * n,
                                pipeline_mode=pl.Buffered(1))
        return pl.BlockSpec(shape, lambda i, n=n: (0,) * n)

    return pl.pallas_call(
        functools.partial(encoder_kernel, tb=tb, L=L),
        out_shape=jax.ShapeDtypeStruct((n_rows_pad, D), jnp.float32),
        grid=(steps,),
        in_specs=[
            pl.BlockSpec((rows, D), lambda i: (i, 0)),     # x row slab (double-buffered)
            const_spec((L, L)),                            # A
            const_spec((L, D)),                            # b_mix (f32)
            const_spec((D, D)),                            # Wc = Wv^T Wo^T
            const_spec((1, D)), const_spec((1, D)),        # norm1 gamma, beta
            const_spec((D, d_ff)), const_spec((1, d_ff)),  # conv1 W^T, b
            const_spec((d_ff, D)), const_spec((1, D)),     # conv2 W^T, b
            const_spec((1, D)), const_spec((1, D)),        # norm2 gamma, beta
        ],
        out_specs=pl.BlockSpec((rows, D), lambda i: (i, 0)),
        compiler_params=pltpu.CompilerParams(
            dimension_semantics=("parallel",),
            vmem_limit_bytes=vmem_limit),
    )


def linear_encoder_abla_design(x, prepped, *, tb=None):
    """x: (B, L, D) float32.  prepped: output of prepare_params().  Returns (out, None)."""
    B, L, D = x.shape
    d_ff = prepped["w1T"].shape[1]
    if tb is None:
        tb = _choose_tb(B, L, D, d_ff)
    tb = max(1, min(tb, B))

    rows = tb * L
    B_pad = -(-B // tb) * tb                       # pad B up to a multiple of tb
    x2 = x.reshape(B * L, D).astype(jnp.float32)
    if B_pad != B:
        pad = jnp.zeros(((B_pad - B) * L, D), x2.dtype)
        x2 = jnp.concatenate([x2, pad], axis=0)

    weight_bytes = sum(int(v.size) * v.dtype.itemsize for v in prepped.values())
    vmem_limit = _vmem_limit_bytes(rows, D, d_ff, weight_bytes)

    args = (x2, prepped["A"], prepped["b_mix"], prepped["wc"],
            prepped["g1"], prepped["be1"], prepped["w1T"], prepped["b1"],
            prepped["w2T"], prepped["b2"], prepped["g2"], prepped["be2"])

    try:
        out = _build_call(rows=rows, n_rows_pad=B_pad * L, D=D, d_ff=d_ff, L=L, tb=tb,
                          vmem_limit=vmem_limit, single_buffer_weights=True)(*args)
    except Exception:
        # pipeline_mode / pl.Buffered(1) not supported on this jax version:
        # fall back to default double-buffered weights (identical semantics).
        out = _build_call(rows=rows, n_rows_pad=B_pad * L, D=D, d_ff=d_ff, L=L, tb=tb,
                          vmem_limit=vmem_limit, single_buffer_weights=False)(*args)

    out = out[: B * L].reshape(B, L, D)
    return out, None                               # module returns (output, attn=None)


def prepare_params(params, compute_dtype=jnp.bfloat16):
    """One-time parameter prep (hoisted out of the per-call path).

    * Builds A = L1norm(softmax(CovMat,-1) + softplus(weight_mat), dim=-1).
    * Folds out_proj into v_proj:  Wc = Wv^T Wo^T,  b_mix = rowsum(A) ⊗ (bv Wo^T) + bo,
      so the kernel runs one projection matmul instead of two (exact in f32).
    * compute_dtype is the matmul-operand dtype: bf16 by default (MXU-native on
      v6e/v7x, halves weight VMEM/DMA; also a win on v5e).  Accumulation, residuals
      and LayerNorms stay f32.  Pass jnp.float32 for tight reference comparisons.
    """
    cd = compute_dtype
    A = jax.nn.softmax(params["cov_mat"], axis=-1) + jax.nn.softplus(params["weight_mat"])
    A = A / jnp.maximum(jnp.sum(jnp.abs(A), axis=-1, keepdims=True), 1e-12)
    wc = params["wv"].T @ params["wo"].T                       # (D, D)
    bv_wo = params["bv"] @ params["wo"].T                      # (D,)
    b_mix = jnp.sum(A, axis=-1, keepdims=True) * bv_wo[None, :] + params["bo"][None, :]
    return {
        "A": A.astype(cd),
        "wc": wc.astype(cd),
        "b_mix": b_mix.astype(jnp.float32),                    # (L, D), stays f32
        "g1": params["g1"].reshape(1, -1), "be1": params["be1"].reshape(1, -1),
        "w1T": params["w1"].T.astype(cd), "b1": params["b1"].reshape(1, -1),
        "w2T": params["w2"].T.astype(cd), "b2": params["b2"].reshape(1, -1),
        "g2": params["g2"].reshape(1, -1), "be2": params["be2"].reshape(1, -1),
    }


def init_params(key, L, D, d_ff):
    ks = jax.random.split(key, 10)
    return {
        "cov_mat": jax.random.normal(ks[0], (L, L), jnp.float32),                # CovMat
        "weight_mat": jnp.eye(L, dtype=jnp.float32)
                      + jax.random.normal(ks[1], (L, L), jnp.float32),           # weight_mat init
        "wv": jax.random.normal(ks[2], (D, D), jnp.float32) * 0.1,               # v_proj.weight
        "bv": jax.random.normal(ks[3], (D,), jnp.float32) * 0.1,                 # v_proj.bias
        "wo": jax.random.normal(ks[4], (D, D), jnp.float32) * 0.1,               # out_proj.weight
        "bo": jax.random.normal(ks[5], (D,), jnp.float32) * 0.1,                 # out_proj.bias
        "w1": jax.random.normal(ks[6], (d_ff, D), jnp.float32) * 0.1,            # conv1.weight (k=1)
        "b1": jax.random.normal(ks[7], (d_ff,), jnp.float32) * 0.1,              # conv1.bias
        "w2": jax.random.normal(ks[8], (D, d_ff), jnp.float32) * 0.1,            # conv2.weight (k=1)
        "b2": jax.random.normal(ks[9], (D,), jnp.float32) * 0.1,                 # conv2.bias
        "g1": jnp.ones((D,), jnp.float32), "be1": jnp.zeros((D,), jnp.float32),  # norm1
        "g2": jnp.ones((D,), jnp.float32), "be2": jnp.zeros((D,), jnp.float32),  # norm2
    }


def reference(x, p):
    """Pure-JAX mirror of the PyTorch forward (eval mode, unfused)."""
    values = x @ p["wv"].T + p["bv"]
    A = jax.nn.softmax(p["cov_mat"], axis=-1) + jax.nn.softplus(p["weight_mat"])
    A = A / jnp.maximum(jnp.sum(jnp.abs(A), axis=-1, keepdims=True), 1e-12)
    new_x = jnp.einsum("ts,bsd->btd", A, values)
    new_x = new_x @ p["wo"].T + p["bo"]
    x = _layernorm(x + new_x, p["g1"], p["be1"])
    y = jnp.maximum(x @ p["w1"].T + p["b1"], 0.0)
    y = y @ p["w2"].T + p["b2"]
    return _layernorm(x + y, p["g2"], p["be2"])


if __name__ == "__main__":
    B, L, D, d_ff = 2, 8, 32, 128   # batch, token_num, d_model, d_ff
    key = jax.random.PRNGKey(0)
    kx, kp = jax.random.split(key)
    x = jax.random.normal(kx, (B, L, D), jnp.float32)
    params = init_params(kp, L, D, d_ff)
    ref = reference(x, params)

    # f32 compute path: tight check against the pure-JAX reference.
    out32, attn = linear_encoder_abla_design(x, prepare_params(params, jnp.float32))
    out32 = jax.block_until_ready(out32)
    assert out32.shape == (B, L, D)
    assert attn is None
    err32 = float(jnp.max(jnp.abs(out32 - ref)))
    assert jnp.allclose(out32, ref, atol=1e-4, rtol=1e-4), f"f32 mismatch, max err {err32}"

    # Default bf16 (MXU-native) path: looser tolerance for bf16 operand rounding.
    out_bf, _ = linear_encoder_abla_design(x, prepare_params(params))
    out_bf = jax.block_until_ready(out_bf)
    err_bf = float(jnp.max(jnp.abs(out_bf - ref)))
    assert jnp.allclose(out_bf, ref, atol=2e-1, rtol=2e-1), f"bf16 mismatch, max err {err_bf}"

    print("KERNEL_OK")
</pallas_src>

<mosaic_0001>
module attributes {stable_mosaic.version = 11 : i64} {
  func.func @encoder_kernel(%arg0: i32, %arg1: memref<16x32xf32, #tpu.memory_space<vmem>>, %arg2: memref<8x8xf32, #tpu.memory_space<vmem>>, %arg3: memref<8x32xf32, #tpu.memory_space<vmem>>, %arg4: memref<32x32xf32, #tpu.memory_space<vmem>>, %arg5: memref<1x32xf32, #tpu.memory_space<vmem>>, %arg6: memref<1x32xf32, #tpu.memory_space<vmem>>, %arg7: memref<32x128xf32, #tpu.memory_space<vmem>>, %arg8: memref<1x128xf32, #tpu.memory_space<vmem>>, %arg9: memref<128x32xf32, #tpu.memory_space<vmem>>, %arg10: memref<1x32xf32, #tpu.memory_space<vmem>>, %arg11: memref<1x32xf32, #tpu.memory_space<vmem>>, %arg12: memref<1x32xf32, #tpu.memory_space<vmem>>, %arg13: memref<16x32xf32, #tpu.memory_space<vmem>>) attributes {dimension_semantics = [#tpu.dimension_semantics<parallel>], iteration_bounds = array<i64: 1>, scalar_prefetch = 0 : i64, scratch_operands = 0 : i64, tpu.core_type = #tpu.core_type<tc>, window_params = [{transform_indices = @transform_0, window_bounds = array<i64: 16, 32>}, {pipeline_mode = #tpu.pipeline_mode<synchronous>, transform_indices = @transform_1, window_bounds = array<i64: 8, 8>}, {pipeline_mode = #tpu.pipeline_mode<synchronous>, transform_indices = @transform_2, window_bounds = array<i64: 8, 32>}, {pipeline_mode = #tpu.pipeline_mode<synchronous>, transform_indices = @transform_3, window_bounds = array<i64: 32, 32>}, {pipeline_mode = #tpu.pipeline_mode<synchronous>, transform_indices = @transform_4, window_bounds = array<i64: 1, 32>}, {pipeline_mode = #tpu.pipeline_mode<synchronous>, transform_indices = @transform_5, window_bounds = array<i64: 1, 32>}, {pipeline_mode = #tpu.pipeline_mode<synchronous>, transform_indices = @transform_6, window_bounds = array<i64: 32, 128>}, {pipeline_mode = #tpu.pipeline_mode<synchronous>, transform_indices = @transform_7, window_bounds = array<i64: 1, 128>}, {pipeline_mode = #tpu.pipeline_mode<synchronous>, transform_indices = @transform_8, window_bounds = array<i64: 128, 32>}, {pipeline_mode = #tpu.pipeline_mode<synchronous>, transform_indices = @transform_9, window_bounds = array<i64: 1, 32>}, {pipeline_mode = #tpu.pipeline_mode<synchronous>, transform_indices = @transform_10, window_bounds = array<i64: 1, 32>}, {pipeline_mode = #tpu.pipeline_mode<synchronous>, transform_indices = @transform_11, window_bounds = array<i64: 1, 32>}, {transform_indices = @transform_12, window_bounds = array<i64: 16, 32>}]} {
    %c0 = arith.constant 0 : index
    %c0_0 = arith.constant 0 : index
    %0 = vector.load %arg1[%c0, %c0_0] : memref<16x32xf32, #tpu.memory_space<vmem>>, vector<16x32xf32>
    %c0_1 = arith.constant 0 : index
    %c0_2 = arith.constant 0 : index
    %1 = vector.load %arg4[%c0_1, %c0_2] : memref<32x32xf32, #tpu.memory_space<vmem>>, vector<32x32xf32>
    %cst = arith.constant dense<0.000000e+00> : vector<16x32xf32>
    %2 = tpu.matmul %0, %1, %cst {dimension_numbers = #tpu.dot_dimension_numbers<[1], [0], [0], [1], [0, 0, 1, 1], [], []>} : vector<16x32xf32>, vector<32x32xf32>, vector<16x32xf32> -> vector<16x32xf32>
    %3 = vector.shape_cast %2 : vector<16x32xf32> to vector<2x8x32xf32>
    %c0_3 = arith.constant 0 : index
    %c0_4 = arith.constant 0 : index
    %4 = vector.load %arg2[%c0_3, %c0_4] : memref<8x8xf32, #tpu.memory_space<vmem>>, vector<8x8xf32>
    %5 = vector.shape_cast %4 : vector<8x8xf32> to vector<1x8x8xf32>
    %6 = vector.broadcast %5 : vector<1x8x8xf32> to vector<2x8x8xf32>
    "tpu.trace_start"() <{level = 10 : i32, message = "bts,bsd->btd"}> : () -> ()
    %cst_5 = arith.constant dense<0.000000e+00> : vector<2x8x32xf32>
    %7 = tpu.matmul %6, %3, %cst_5 {dimension_numbers = #tpu.dot_dimension_numbers<[2], [1], [1], [2], [0, 0, 0, 1, 1, 2], [0], [0]>} : vector<2x8x8xf32>, vector<2x8x32xf32>, vector<2x8x32xf32> -> vector<2x8x32xf32>
    "tpu.trace_stop"() : () -> ()
    %c0_6 = arith.constant 0 : index
    %c0_7 = arith.constant 0 : index
    %8 = vector.load %arg3[%c0_6, %c0_7] : memref<8x32xf32, #tpu.memory_space<vmem>>, vector<8x32xf32>
    %9 = vector.shape_cast %8 : vector<8x32xf32> to vector<1x8x32xf32>
    %10 = vector.broadcast %9 : vector<1x8x32xf32> to vector<2x8x32xf32>
    %11 = arith.addf %7, %10 : vector<2x8x32xf32>
    %12 = vector.shape_cast %11 : vector<2x8x32xf32> to vector<16x32xf32>
    %13 = arith.addf %0, %12 : vector<16x32xf32>
    %c0_8 = arith.constant 0 : index
    %c0_9 = arith.constant 0 : index
    %14 = vector.load %arg5[%c0_8, %c0_9] : memref<1x32xf32, #tpu.memory_space<vmem>>, vector<1x32xf32>
    %c0_10 = arith.constant 0 : index
    %c0_11 = arith.constant 0 : index
    %15 = vector.load %arg6[%c0_10, %c0_11] : memref<1x32xf32, #tpu.memory_space<vmem>>, vector<1x32xf32>
    %cst_12 = arith.constant dense<0.000000e+00> : vector<16xf32>
    %16 = vector.multi_reduction <add>, %13, %cst_12 [1] : vector<16x32xf32> to vector<16xf32>
    %17 = vector.shape_cast %16 : vector<16xf32> to vector<16x1xf32>
    %cst_13 = arith.constant 3.200000e+01 : f32
    %18 = vector.broadcast %cst_13 : f32 to vector<16x1xf32>
    %19 = arith.divf %17, %18 : vector<16x1xf32>
    %20 = arith.mulf %13, %13 : vector<16x32xf32>
    %cst_14 = arith.constant dense<0.000000e+00> : vector<16xf32>
    %21 = vector.multi_reduction <add>, %20, %cst_14 [1] : vector<16x32xf32> to vector<16xf32>
    %22 = vector.shape_cast %21 : vector<16xf32> to vector<16x1xf32>
    %cst_15 = arith.constant 3.200000e+01 : f32
    %23 = vector.broadcast %cst_15 : f32 to vector<16x1xf32>
    %24 = arith.divf %22, %23 : vector<16x1xf32>
    %25 = arith.mulf %19, %19 : vector<16x1xf32>
    %26 = arith.subf %24, %25 : vector<16x1xf32>
    %cst_16 = arith.constant 0.000000e+00 : f32
    %27 = vector.broadcast %cst_16 : f32 to vector<16x1xf32>
    %28 = arith.maximumf %26, %27 : vector<16x1xf32>
    %29 = vector.broadcast %19 : vector<16x1xf32> to vector<16x32xf32>
    %30 = arith.subf %13, %29 : vector<16x32xf32>
    %cst_17 = arith.constant 9.99999974E-6 : f32
    %31 = vector.broadcast %cst_17 : f32 to vector<16x1xf32>
    %32 = arith.addf %28, %31 : vector<16x1xf32>
    %33 = math.rsqrt %32 : vector<16x1xf32>
    %34 = vector.broadcast %33 : vector<16x1xf32> to vector<16x32xf32>
    %35 = arith.mulf %30, %34 : vector<16x32xf32>
    %36 = vector.broadcast %14 : vector<1x32xf32> to vector<16x32xf32>
    %37 = arith.mulf %35, %36 : vector<16x32xf32>
    %38 = vector.broadcast %15 : vector<1x32xf32> to vector<16x32xf32>
    %39 = arith.addf %37, %38 : vector<16x32xf32>
    %c0_18 = arith.constant 0 : index
    %c0_19 = arith.constant 0 : index
    %40 = vector.load %arg7[%c0_18, %c0_19] : memref<32x128xf32, #tpu.memory_space<vmem>>, vector<32x128xf32>
    %cst_20 = arith.constant dense<0.000000e+00> : vector<16x128xf32>
    %41 = tpu.matmul %39, %40, %cst_20 {dimension_numbers = #tpu.dot_dimension_numbers<[1], [0], [0], [1], [0, 0, 1, 1], [], []>} : vector<16x32xf32>, vector<32x128xf32>, vector<16x128xf32> -> vector<16x128xf32>
    %c0_21 = arith.constant 0 : index
    %c0_22 = arith.constant 0 : index
    %42 = vector.load %arg8[%c0_21, %c0_22] : memref<1x128xf32, #tpu.memory_space<vmem>>, vector<1x128xf32>
    %43 = vector.broadcast %42 : vector<1x128xf32> to vector<16x128xf32>
    %44 = arith.addf %41, %43 : vector<16x128xf32>
    %cst_23 = arith.constant 0.000000e+00 : f32
    %45 = vector.broadcast %cst_23 : f32 to vector<16x128xf32>
    %46 = arith.maximumf %44, %45 : vector<16x128xf32>
    %c0_24 = arith.constant 0 : index
    %c0_25 = arith.constant 0 : index
    %47 = vector.load %arg9[%c0_24, %c0_25] : memref<128x32xf32, #tpu.memory_space<vmem>>, vector<128x32xf32>
    %cst_26 = arith.constant dense<0.000000e+00> : vector<16x32xf32>
    %48 = tpu.matmul %46, %47, %cst_26 {dimension_numbers = #tpu.dot_dimension_numbers<[1], [0], [0], [1], [0, 0, 1, 1], [], []>} : vector<16x128xf32>, vector<128x32xf32>, vector<16x32xf32> -> vector<16x32xf32>
    %c0_27 = arith.constant 0 : index
    %c0_28 = arith.constant 0 : index
    %49 = vector.load %arg10[%c0_27, %c0_28] : memref<1x32xf32, #tpu.memory_space<vmem>>, vector<1x32xf32>
    %50 = vector.broadcast %49 : vector<1x32xf32> to vector<16x32xf32>
    %51 = arith.addf %48, %50 : vector<16x32xf32>
    %52 = arith.addf %39, %51 : vector<16x32xf32>
    %c0_29 = arith.constant 0 : index
    %c0_30 = arith.constant 0 : index
    %53 = vector.load %arg11[%c0_29, %c0_30] : memref<1x32xf32, #tpu.memory_space<vmem>>, vector<1x32xf32>
    %c0_31 = arith.constant 0 : index
    %c0_32 = arith.constant 0 : index
    %54 = vector.load %arg12[%c0_31, %c0_32] : memref<1x32xf32, #tpu.memory_space<vmem>>, vector<1x32xf32>
    %cst_33 = arith.constant dense<0.000000e+00> : vector<16xf32>
    %55 = vector.multi_reduction <add>, %52, %cst_33 [1] : vector<16x32xf32> to vector<16xf32>
    %56 = vector.shape_cast %55 : vector<16xf32> to vector<16x1xf32>
    %cst_34 = arith.constant 3.200000e+01 : f32
    %57 = vector.broadcast %cst_34 : f32 to vector<16x1xf32>
    %58 = arith.divf %56, %57 : vector<16x1xf32>
    %59 = arith.mulf %52, %52 : vector<16x32xf32>
    %cst_35 = arith.constant dense<0.000000e+00> : vector<16xf32>
    %60 = vector.multi_reduction <add>, %59, %cst_35 [1] : vector<16x32xf32> to vector<16xf32>
    %61 = vector.shape_cast %60 : vector<16xf32> to vector<16x1xf32>
    %cst_36 = arith.constant 3.200000e+01 : f32
    %62 = vector.broadcast %cst_36 : f32 to vector<16x1xf32>
    %63 = arith.divf %61, %62 : vector<16x1xf32>
    %64 = arith.mulf %58, %58 : vector<16x1xf32>
    %65 = arith.subf %63, %64 : vector<16x1xf32>
    %cst_37 = arith.constant 0.000000e+00 : f32
    %66 = vector.broadcast %cst_37 : f32 to vector<16x1xf32>
    %67 = arith.maximumf %65, %66 : vector<16x1xf32>
    %68 = vector.broadcast %58 : vector<16x1xf32> to vector<16x32xf32>
    %69 = arith.subf %52, %68 : vector<16x32xf32>
    %cst_38 = arith.constant 9.99999974E-6 : f32
    %70 = vector.broadcast %cst_38 : f32 to vector<16x1xf32>
    %71 = arith.addf %67, %70 : vector<16x1xf32>
    %72 = math.rsqrt %71 : vector<16x1xf32>
    %73 = vector.broadcast %72 : vector<16x1xf32> to vector<16x32xf32>
    %74 = arith.mulf %69, %73 : vector<16x32xf32>
    %75 = vector.broadcast %53 : vector<1x32xf32> to vector<16x32xf32>
    %76 = arith.mulf %74, %75 : vector<16x32xf32>
    %77 = vector.broadcast %54 : vector<1x32xf32> to vector<16x32xf32>
    %78 = arith.addf %76, %77 : vector<16x32xf32>
    %c0_39 = arith.constant 0 : index
    %c0_40 = arith.constant 0 : index
    %79 = vector.load %arg13[%c0_39, %c0_40] : memref<16x32xf32, #tpu.memory_space<vmem>>, vector<16x32xf32>
    tpu.vector_store %arg13[%c0_39, %c0_40], %78 {strides = array<i32>} : memref<16x32xf32, #tpu.memory_space<vmem>>, vector<16x32xf32>,
    return
  }
  func.func @transform_0(%arg0: i32) -> (i32, i32) {
    %c0_i32 = arith.constant 0 : i32
    %c0_i32_0 = arith.constant 0 : i32
    return %arg0, %c0_i32 : i32, i32
  }
  func.func @transform_1(%arg0: i32) -> (i32, i32) {
    %c0_i32 = arith.constant 0 : i32
    %c0_i32_0 = arith.constant 0 : i32
    %c0_i32_1 = arith.constant 0 : i32
    return %c0_i32, %c0_i32_0 : i32, i32
  }
  func.func @transform_2(%arg0: i32) -> (i32, i32) {
    %c0_i32 = arith.constant 0 : i32
    %c0_i32_0 = arith.constant 0 : i32
    %c0_i32_1 = arith.constant 0 : i32
    return %c0_i32, %c0_i32_0 : i32, i32
  }
  func.func @transform_3(%arg0: i32) -> (i32, i32) {
    %c0_i32 = arith.constant 0 : i32
    %c0_i32_0 = arith.constant 0 : i32
    %c0_i32_1 = arith.constant 0 : i32
    return %c0_i32, %c0_i32_0 : i32, i32
  }
  func.func @transform_4(%arg0: i32) -> (i32, i32) {
    %c0_i32 = arith.constant 0 : i32
    %c0_i32_0 = arith.constant 0 : i32
    %c0_i32_1 = arith.constant 0 : i32
    return %c0_i32, %c0_i32_0 : i32, i32
  }
  func.func @transform_5(%arg0: i32) -> (i32, i32) {
    %c0_i32 = arith.constant 0 : i32
    %c0_i32_0 = arith.constant 0 : i32
    %c0_i32_1 = arith.constant 0 : i32
    return %c0_i32, %c0_i32_0 : i32, i32
  }
  func.func @transform_6(%arg0: i32) -> (i32, i32) {
    %c0_i32 = arith.constant 0 : i32
    %c0_i32_0 = arith.constant 0 : i32
    %c0_i32_1 = arith.constant 0 : i32
    return %c0_i32, %c0_i32_0 : i32, i32
  }
  func.func @transform_7(%arg0: i32) -> (i32, i32) {
    %c0_i32 = arith.constant 0 : i32
    %c0_i32_0 = arith.constant 0 : i32
    %c0_i32_1 = arith.constant 0 : i32
    return %c0_i32, %c0_i32_0 : i32, i32
  }
  func.func @transform_8(%arg0: i32) -> (i32, i32) {
    %c0_i32 = arith.constant 0 : i32
    %c0_i32_0 = arith.constant 0 : i32
    %c0_i32_1 = arith.constant 0 : i32
    return %c0_i32, %c0_i32_0 : i32, i32
  }
  func.func @transform_9(%arg0: i32) -> (i32, i32) {
    %c0_i32 = arith.constant 0 : i32
    %c0_i32_0 = arith.constant 0 : i32
    %c0_i32_1 = arith.constant 0 : i32
    return %c0_i32, %c0_i32_0 : i32, i32
  }
  func.func @transform_10(%arg0: i32) -> (i32, i32) {
    %c0_i32 = arith.constant 0 : i32
    %c0_i32_0 = arith.constant 0 : i32
    %c0_i32_1 = arith.constant 0 : i32
    return %c0_i32, %c0_i32_0 : i32, i32
  }
  func.func @transform_11(%arg0: i32) -> (i32, i32) {
    %c0_i32 = arith.constant 0 : i32
    %c0_i32_0 = arith.constant 0 : i32
    %c0_i32_1 = arith.constant 0 : i32
    return %c0_i32, %c0_i32_0 : i32, i32
  }
  func.func @transform_12(%arg0: i32) -> (i32, i32) {
    %c0_i32 = arith.constant 0 : i32
    %c0_i32_0 = arith.constant 0 : i32
    return %arg0, %c0_i32 : i32, i32
  }
}

module attributes {stable_mosaic.version = 11 : i64} {
  func.func @encoder_kernel(%arg0: i32, %arg1: memref<16x32xf32, #tpu.memory_space<vmem>>, %arg2: memref<8x8xf32, #tpu.memory_space<vmem>>, %arg3: memref<8x32xf32, #tpu.memory_space<vmem>>, %arg4: memref<32x32xf32, #tpu.memory_space<vmem>>, %arg5: memref<1x32xf32, #tpu.memory_space<vmem>>, %arg6: memref<1x32xf32, #tpu.memory_space<vmem>>, %arg7: memref<32x128xf32, #tpu.memory_space<vmem>>, %arg8: memref<1x128xf32, #tpu.memory_space<vmem>>, %arg9: memref<128x32xf32, #tpu.memory_space<vmem>>, %arg10: memref<1x32xf32, #tpu.memory_space<vmem>>, %arg11: memref<1x32xf32, #tpu.memory_space<vmem>>, %arg12: memref<1x32xf32, #tpu.memory_space<vmem>>, %arg13: memref<16x32xf32, #tpu.memory_space<vmem>>) attributes {dimension_semantics = [#tpu.dimension_semantics<parallel>], iteration_bounds = array<i64: 1>, scalar_prefetch = 0 : i64, scratch_operands = 0 : i64, tpu.core_type = #tpu.core_type<tc>, window_params = [{transform_indices = @transform_0, window_bounds = array<i64: 16, 32>}, {pipeline_mode = #tpu.pipeline_mode<synchronous>, transform_indices = @transform_1, window_bounds = array<i64: 8, 8>}, {pipeline_mode = #tpu.pipeline_mode<synchronous>, transform_indices = @transform_2, window_bounds = array<i64: 8, 32>}, {pipeline_mode = #tpu.pipeline_mode<synchronous>, transform_indices = @transform_3, window_bounds = array<i64: 32, 32>}, {pipeline_mode = #tpu.pipeline_mode<synchronous>, transform_indices = @transform_4, window_bounds = array<i64: 1, 32>}, {pipeline_mode = #tpu.pipeline_mode<synchronous>, transform_indices = @transform_5, window_bounds = array<i64: 1, 32>}, {pipeline_mode = #tpu.pipeline_mode<synchronous>, transform_indices = @transform_6, window_bounds = array<i64: 32, 128>}, {pipeline_mode = #tpu.pipeline_mode<synchronous>, transform_indices = @transform_7, window_bounds = array<i64: 1, 128>}, {pipeline_mode = #tpu.pipeline_mode<synchronous>, transform_indices = @transform_8, window_bounds = array<i64: 128, 32>}, {pipeline_mode = #tpu.pipeline_mode<synchronous>, transform_indices = @transform_9, window_bounds = array<i64: 1, 32>}, {pipeline_mode = #tpu.pipeline_mode<synchronous>, transform_indices = @transform_10, window_bounds = array<i64: 1, 32>}, {pipeline_mode = #tpu.pipeline_mode<synchronous>, transform_indices = @transform_11, window_bounds = array<i64: 1, 32>}, {transform_indices = @transform_12, window_bounds = array<i64: 16, 32>}]} {
    %c0 = arith.constant 0 : index
    %c0_0 = arith.constant 0 : index
    %0 = vector.load %arg1[%c0, %c0_0] : memref<16x32xf32, #tpu.memory_space<vmem>>, vector<16x32xf32>
    %c0_1 = arith.constant 0 : index
    %c0_2 = arith.constant 0 : index
    %1 = vector.load %arg4[%c0_1, %c0_2] : memref<32x32xf32, #tpu.memory_space<vmem>>, vector<32x32xf32>
    %cst = arith.constant dense<0.000000e+00> : vector<16x32xf32>
    %2 = tpu.matmul %0, %1, %cst {dimension_numbers = #tpu.dot_dimension_numbers<[1], [0], [0], [1], [0, 0, 1, 1], [], []>} : vector<16x32xf32>, vector<32x32xf32>, vector<16x32xf32> -> vector<16x32xf32>
    %3 = vector.shape_cast %2 : vector<16x32xf32> to vector<2x8x32xf32>
    %c0_3 = arith.constant 0 : index
    %c0_4 = arith.constant 0 : index
    %4 = vector.load %arg2[%c0_3, %c0_4] : memref<8x8xf32, #tpu.memory_space<vmem>>, vector<8x8xf32>
    %5 = vector.shape_cast %4 : vector<8x8xf32> to vector<1x8x8xf32>
    %6 = vector.broadcast %5 : vector<1x8x8xf32> to vector<2x8x8xf32>
    "tpu.trace_start"() <{level = 10 : i32, message = "bts,bsd->btd"}> : () -> ()
    %cst_5 = arith.constant dense<0.000000e+00> : vector<2x8x32xf32>
    %7 = tpu.matmul %6, %3, %cst_5 {dimension_numbers = #tpu.dot_dimension_numbers<[2], [1], [1], [2], [0, 0, 0, 1, 1, 2], [0], [0]>} : vector<2x8x8xf32>, vector<2x8x32xf32>, vector<2x8x32xf32> -> vector<2x8x32xf32>
    "tpu.trace_stop"() : () -> ()
    %c0_6 = arith.constant 0 : index
    %c0_7 = arith.constant 0 : index
    %8 = vector.load %arg3[%c0_6, %c0_7] : memref<8x32xf32, #tpu.memory_space<vmem>>, vector<8x32xf32>
    %9 = vector.shape_cast %8 : vector<8x32xf32> to vector<1x8x32xf32>
    %10 = vector.broadcast %9 : vector<1x8x32xf32> to vector<2x8x32xf32>
    %11 = arith.addf %7, %10 : vector<2x8x32xf32>
    %12 = vector.shape_cast %11 : vector<2x8x32xf32> to vector<16x32xf32>
    %13 = arith.addf %0, %12 : vector<16x32xf32>
    %c0_8 = arith.constant 0 : index
    %c0_9 = arith.constant 0 : index
    %14 = vector.load %arg5[%c0_8, %c0_9] : memref<1x32xf32, #tpu.memory_space<vmem>>, vector<1x32xf32>
    %c0_10 = arith.constant 0 : index
    %c0_11 = arith.constant 0 : index
    %15 = vector.load %arg6[%c0_10, %c0_11] : memref<1x32xf32, #tpu.memory_space<vmem>>, vector<1x32xf32>
    %cst_12 = arith.constant dense<0.000000e+00> : vector<16xf32>
    %16 = vector.multi_reduction <add>, %13, %cst_12 [1] : vector<16x32xf32> to vector<16xf32>
    %17 = vector.shape_cast %16 : vector<16xf32> to vector<16x1xf32>
    %cst_13 = arith.constant 3.200000e+01 : f32
    %18 = vector.broadcast %cst_13 : f32 to vector<16x1xf32>
    %19 = arith.divf %17, %18 : vector<16x1xf32>
    %20 = arith.mulf %13, %13 : vector<16x32xf32>
    %cst_14 = arith.constant dense<0.000000e+00> : vector<16xf32>
    %21 = vector.multi_reduction <add>, %20, %cst_14 [1] : vector<16x32xf32> to vector<16xf32>
    %22 = vector.shape_cast %21 : vector<16xf32> to vector<16x1xf32>
    %cst_15 = arith.constant 3.200000e+01 : f32
    %23 = vector.broadcast %cst_15 : f32 to vector<16x1xf32>
    %24 = arith.divf %22, %23 : vector<16x1xf32>
    %25 = arith.mulf %19, %19 : vector<16x1xf32>
    %26 = arith.subf %24, %25 : vector<16x1xf32>
    %cst_16 = arith.constant 0.000000e+00 : f32
    %27 = vector.broadcast %cst_16 : f32 to vector<16x1xf32>
    %28 = arith.maximumf %26, %27 : vector<16x1xf32>
    %29 = vector.broadcast %19 : vector<16x1xf32> to vector<16x32xf32>
    %30 = arith.subf %13, %29 : vector<16x32xf32>
    %cst_17 = arith.constant 9.99999974E-6 : f32
    %31 = vector.broadcast %cst_17 : f32 to vector<16x1xf32>
    %32 = arith.addf %28, %31 : vector<16x1xf32>
    %33 = math.rsqrt %32 : vector<16x1xf32>
    %34 = vector.broadcast %33 : vector<16x1xf32> to vector<16x32xf32>
    %35 = arith.mulf %30, %34 : vector<16x32xf32>
    %36 = vector.broadcast %14 : vector<1x32xf32> to vector<16x32xf32>
    %37 = arith.mulf %35, %36 : vector<16x32xf32>
    %38 = vector.broadcast %15 : vector<1x32xf32> to vector<16x32xf32>
    %39 = arith.addf %37, %38 : vector<16x32xf32>
    %c0_18 = arith.constant 0 : index
    %c0_19 = arith.constant 0 : index
    %40 = vector.load %arg7[%c0_18, %c0_19] : memref<32x128xf32, #tpu.memory_space<vmem>>, vector<32x128xf32>
    %cst_20 = arith.constant dense<0.000000e+00> : vector<16x128xf32>
    %41 = tpu.matmul %39, %40, %cst_20 {dimension_numbers = #tpu.dot_dimension_numbers<[1], [0], [0], [1], [0, 0, 1, 1], [], []>} : vector<16x32xf32>, vector<32x128xf32>, vector<16x128xf32> -> vector<16x128xf32>
    %c0_21 = arith.constant 0 : index
    %c0_22 = arith.constant 0 : index
    %42 = vector.load %arg8[%c0_21, %c0_22] : memref<1x128xf32, #tpu.memory_space<vmem>>, vector<1x128xf32>
    %43 = vector.broadcast %42 : vector<1x128xf32> to vector<16x128xf32>
    %44 = arith.addf %41, %43 : vector<16x128xf32>
    %cst_23 = arith.constant 0.000000e+00 : f32
    %45 = vector.broadcast %cst_23 : f32 to vector<16x128xf32>
    %46 = arith.maximumf %44, %45 : vector<16x128xf32>
    %c0_24 = arith.constant 0 : index
    %c0_25 = arith.constant 0 : index
    %47 = vector.load %arg9[%c0_24, %c0_25] : memref<128x32xf32, #tpu.memory_space<vmem>>, vector<128x32xf32>
    %cst_26 = arith.constant dense<0.000000e+00> : vector<16x32xf32>
    %48 = tpu.matmul %46, %47, %cst_26 {dimension_numbers = #tpu.dot_dimension_numbers<[1], [0], [0], [1], [0, 0, 1, 1], [], []>} : vector<16x128xf32>, vector<128x32xf32>, vector<16x32xf32> -> vector<16x32xf32>
    %c0_27 = arith.constant 0 : index
    %c0_28 = arith.constant 0 : index
    %49 = vector.load %arg10[%c0_27, %c0_28] : memref<1x32xf32, #tpu.memory_space<vmem>>, vector<1x32xf32>
    %50 = vector.broadcast %49 : vector<1x32xf32> to vector<16x32xf32>
    %51 = arith.addf %48, %50 : vector<16x32xf32>
    %52 = arith.addf %39, %51 : vector<16x32xf32>
    %c0_29 = arith.constant 0 : index
    %c0_30 = arith.constant 0 : index
    %53 = vector.load %arg11[%c0_29, %c0_30] : memref<1x32xf32, #tpu.memory_space<vmem>>, vector<1x32xf32>
    %c0_31 = arith.constant 0 : index
    %c0_32 = arith.constant 0 : index
    %54 = vector.load %arg12[%c0_31, %c0_32] : memref<1x32xf32, #tpu.memory_space<vmem>>, vector<1x32xf32>
    %cst_33 = arith.constant dense<0.000000e+00> : vector<16xf32>
    %55 = vector.multi_reduction <add>, %52, %cst_33 [1] : vector<16x32xf32> to vector<16xf32>
    %56 = vector.shape_cast %55 : vector<16xf32> to vector<16x1xf32>
    %cst_34 = arith.constant 3.200000e+01 : f32
    %57 = vector.broadcast %cst_34 : f32 to vector<16x1xf32>
    %58 = arith.divf %56, %57 : vector<16x1xf32>
    %59 = arith.mulf %52, %52 : vector<16x32xf32>
    %cst_35 = arith.constant dense<0.000000e+00> : vector<16xf32>
    %60 = vector.multi_reduction <add>, %59, %cst_35 [1] : vector<16x32xf32> to vector<16xf32>
    %61 = vector.shape_cast %60 : vector<16xf32> to vector<16x1xf32>
    %cst_36 = arith.constant 3.200000e+01 : f32
    %62 = vector.broadcast %cst_36 : f32 to vector<16x1xf32>
    %63 = arith.divf %61, %62 : vector<16x1xf32>
    %64 = arith.mulf %58, %58 : vector<16x1xf32>
    %65 = arith.subf %63, %64 : vector<16x1xf32>
    %cst_37 = arith.constant 0.000000e+00 : f32
    %66 = vector.broadcast %cst_37 : f32 to vector<16x1xf32>
    %67 = arith.maximumf %65, %66 : vector<16x1xf32>
    %68 = vector.broadcast %58 : vector<16x1xf32> to vector<16x32xf32>
    %69 = arith.subf %52, %68 : vector<16x32xf32>
    %cst_38 = arith.constant 9.99999974E-6 : f32
    %70 = vector.broadcast %cst_38 : f32 to vector<16x1xf32>
    %71 = arith.addf %67, %70 : vector<16x1xf32>
    %72 = math.rsqrt %71 : vector<16x1xf32>
    %73 = vector.broadcast %72 : vector<16x1xf32> to vector<16x32xf32>
    %74 = arith.mulf %69, %73 : vector<16x32xf32>
    %75 = vector.broadcast %53 : vector<1x32xf32> to vector<16x32xf32>
    %76 = arith.mulf %74, %75 : vector<16x32xf32>
    %77 = vector.broadcast %54 : vector<1x32xf32> to vector<16x32xf32>
    %78 = arith.addf %76, %77 : vector<16x32xf32>
    %c0_39 = arith.constant 0 : index
    %c0_40 = arith.constant 0 : index
    %79 = vector.load %arg13[%c0_39, %c0_40] : memref<16x32xf32, #tpu.memory_space<vmem>>, vector<16x32xf32>
    tpu.vector_store %arg13[%c0_39, %c0_40], %78 {strides = array<i32>} : memref<16x32xf32, #tpu.memory_space<vmem>>, vector<16x32xf32>,
    return
  }
  func.func @transform_0(%arg0: i32) -> (i32, i32) {
    %c0_i32 = arith.constant 0 : i32
    %c0_i32_0 = arith.constant 0 : i32
    return %arg0, %c0_i32 : i32, i32
  }
  func.func @transform_1(%arg0: i32) -> (i32, i32) {
    %c0_i32 = arith.constant 0 : i32
    %c0_i32_0 = arith.constant 0 : i32
    %c0_i32_1 = arith.constant 0 : i32
    return %c0_i32, %c0_i32_0 : i32, i32
  }
  func.func @transform_2(%arg0: i32) -> (i32, i32) {
    %c0_i32 = arith.constant 0 : i32
    %c0_i32_0 = arith.constant 0 : i32
    %c0_i32_1 = arith.constant 0 : i32
    return %c0_i32, %c0_i32_0 : i32, i32
  }
  func.func @transform_3(%arg0: i32) -> (i32, i32) {
    %c0_i32 = arith.constant 0 : i32
    %c0_i32_0 = arith.constant 0 : i32
    %c0_i32_1 = arith.constant 0 : i32
    return %c0_i32, %c0_i32_0 : i32, i32
  }
  func.func @transform_4(%arg0: i32) -> (i32, i32) {
    %c0_i32 = arith.constant 0 : i32
    %c0_i32_0 = arith.constant 0 : i32
    %c0_i32_1 = arith.constant 0 : i32
    return %c0_i32, %c0_i32_0 : i32, i32
  }
  func.func @transform_5(%arg0: i32) -> (i32, i32) {
    %c0_i32 = arith.constant 0 : i32
    %c0_i32_0 = arith.constant 0 : i32
    %c0_i32_1 = arith.constant 0 : i32
    return %c0_i32, %c0_i32_0 : i32, i32
  }
  func.func @transform_6(%arg0: i32) -> (i32, i32) {
    %c0_i32 = arith.constant 0 : i32
    %c0_i32_0 = arith.constant 0 : i32
    %c0_i32_1 = arith.constant 0 : i32
    return %c0_i32, %c0_i32_0 : i32, i32
  }
  func.func @transform_7(%arg0: i32) -> (i32, i32) {
    %c0_i32 = arith.constant 0 : i32
    %c0_i32_0 = arith.constant 0 : i32
    %c0_i32_1 = arith.constant 0 : i32
    return %c0_i32, %c0_i32_0 : i32, i32
  }
  func.func @transform_8(%arg0: i32) -> (i32, i32) {
    %c0_i32 = arith.constant 0 : i32
    %c0_i32_0 = arith.constant 0 : i32
    %c0_i32_1 = arith.constant 0 : i32
    return %c0_i32, %c0_i32_0 : i32, i32
  }
  func.func @transform_9(%arg0: i32) -> (i32, i32) {
    %c0_i32 = arith.constant 0 : i32
    %c0_i32_0 = arith.constant 0 : i32
    %c0_i32_1 = arith.constant 0 : i32
    return %c0_i32, %c0_i32_0 : i32, i32
  }
  func.func @transform_10(%arg0: i32) -> (i32, i32) {
    %c0_i32 = arith.constant 0 : i32
    %c0_i32_0 = arith.constant 0 : i32
    %c0_i32_1 = arith.constant 0 : i32
    return %c0_i32, %c0_i32_0 : i32, i32
  }
  func.func @transform_11(%arg0: i32) -> (i32, i32) {
    %c0_i32 = arith.constant 0 : i32
    %c0_i32_0 = arith.constant 0 : i32
    %c0_i32_1 = arith.constant 0 : i32
    return %c0_i32, %c0_i32_0 : i32, i32
  }
  func.func @transform_12(%arg0: i32) -> (i32, i32) {
    %c0_i32 = arith.constant 0 : i32
    %c0_i32_0 = arith.constant 0 : i32
    return %arg0, %c0_i32 : i32, i32
  }
}

</mosaic_0001>

<bundles_post_ra>
// kernel: tpu_custom_call.1
= control target key start
LH: loop header
LB: loop body
LE: loop exit
PB: predicated region body
PF: predicated region fallthrough
CT: control target
= control target key end

     0   :  { %vm48_vm0 = vcmask 261120   ;;  %s940_s0 = inlined_call_operand.vmem [shape: f32[16,32], index: 0, kind: input, shape index: {}]   ;;  %s941_s1 = inlined_call_operand.vmem [shape: f32[8,8], index: 1, kind: input, shape index: {}]   ;;  %s942_s2 = inlined_call_operand.vmem [shape: f32[8,32], index: 2, kind: input, shape index: {}]   ;;  %s943_s3 = inlined_call_operand.vmem [shape: f32[32,32], index: 3, kind: input, shape index: {}]   ;;  %s944_s4 = inlined_call_operand.vmem [shape: f32[1,32], index: 4, kind: input, shape index: {}]   ;;  %s945_s5 = inlined_call_operand.vmem [shape: f32[1,32], index: 5, kind: input, shape index: {}]   ;;  %s946_s6 = inlined_call_operand.vmem [shape: f32[32,128], index: 6, kind: input, shape index: {}]   ;;  %s947_s7 = inlined_call_operand.vmem [shape: f32[1,128], index: 7, kind: input, shape index: {}]   ;;  %s948_s8 = inlined_call_operand.vmem [shape: f32[128,32], index: 8, kind: input, shape index: {}]   ;;  %s949_s9 = inlined_call_operand.vmem [shape: f32[1,32], index: 9, kind: input, shape index: {}]   ;;  %s950_s10 = inlined_call_operand.vmem [shape: f32[1,32], index: 10, kind: input, shape index: {}]   ;;  %s951_s11 = inlined_call_operand.vmem [shape: f32[1,32], index: 11, kind: input, shape index: {}]   ;;  %s952_s12 = inlined_call_operand.hbm [shape: f32[16,32], index: 12, kind: output, shape index: {}]  }
   0x1   :  { %v47_v0 = vld [vmem:[%s943_s3 + $0x18] sm:$0xff]  ;;  %v46_v1 = vld [vmem:[%s943_s3 + $0x10] sm:$0xff]  ;;  %v42_v2 = vld [vmem:[%s940_s0] sm:$0xff] }
   0x2   :  { %637 = vmatprep.subr.mxu1 %v47_v0  ;;  %v45_v3 = vld [vmem:[%s943_s3 + $0x8] sm:$0xff]  ;;  %645 = vmatprep.mubr.msk.f32.mxu1 %vm48_vm0, %v42_v2 }
   0x3   :  { %638 = vmatpush3.msra.mxu1 %v47_v0 }
   0x4   :  { %17 = vsyncpa [#allocation3], 0  ;;  %639 = vmatprep.subr.mxu1 %v46_v1  ;;  %v44_v4 = vld [vmem:[%s943_s3] sm:$0xff]  ;;  %v43_v5 = vld [vmem:[%s940_s0 + $0x8] sm:$0xff]  ;;  %v739_v6 = vmov 0.0   ;;  %vm740_vm1 = vmmov 0  }
   0x5   :  { %640 = vmatpush3.msra.mxu1 %v46_v1  ;;  %v130_v8 = vld [vmem:[%s941_s1] sm:$0xff]  ;;  %vm132_vm2 = vcmask 64512   ;;  %v332_v25 = vld [vmem:[%s946_s6 + $0x18] sm:$0xff]  ;;  %v331_v26 = vld [vmem:[%s946_s6 + $0x10] sm:$0xff] }
   0x6   :  { %641 = vmatprep.subr.mxu1 %v45_v3  ;;  %v131_v10 = vld [vmem:[%s942_s2] sm:$0xff]  ;;  %v330_v27 = vld [vmem:[%s946_s6 + $0x8] sm:$0xff]  ;;  %v438_v29 = vld [vmem:[%s948_s8 + $0x78] sm:$0xff]  ;;  %s741_s2 = smov [#allocation2]  }
   0x7   :  { %642 = vmatpush3.msra.mxu1 %v45_v3  ;;  %v329_v28 = vld [vmem:[%s946_s6] sm:$0xff]  ;;  %v437_v30 = vld [vmem:[%s948_s8 + $0x70] sm:$0xff]  ;;  %669 = vmatprep.subr.mxu0 %v438_v29  ;;  %v436_v31 = vld [vmem:[%s948_s8 + $0x68] sm:$0xff]  ;;  %s580_s17 = sshll.u32 %s741_s2, 4  ;;  %s581_s17 = int_to_ptr.vmem [resolvable:$true] %s580_s17 }
   0x8   :  { %643 = vmatprep.subr.mxu1 %v44_v4  ;;  %670 = vmatpush3.msra.mxu0 %v438_v29  ;;  %v435_v32 = vld [vmem:[%s948_s8 + $0x60] sm:$0xff]  ;;  %v434_v33 = vld [vmem:[%s948_s8 + $0x58] sm:$0xff]  ;;  %v433_v34 = vld [vmem:[%s948_s8 + $0x50] sm:$0xff]  ;;  %p722_p1 = scmp.lt.s32.totalorder %s581_s17, %s581_s17 }
   0x9   :  { %644 = vmatpush3.msra.mxu1 %v44_v4  ;;  %671 = vmatprep.subr.mxu0 %v437_v30  ;;  %v432_v35 = vld [vmem:[%s948_s8 + $0x48] sm:$0xff]  ;;  %v431_v36 = vld [vmem:[%s948_s8 + $0x40] sm:$0xff]  ;;  %v430_v37 = vld [vmem:[%s948_s8 + $0x38] sm:$0xff] }
   0xa   :  { %646 = vmatmul.mubr.msk.f32.vlgmr.msra.gmra.mxu1 %vm48_vm0, %v43_v5  ;;  %648 = vmatprep.subr.mxu1 %v739_v6  ;;  %v429_v38 = vld [vmem:[%s948_s8 + $0x30] sm:$0xff]  ;;  %v428_v39 = vld [vmem:[%s948_s8 + $0x28] sm:$0xff]  ;;  %v427_v40 = vld [vmem:[%s948_s8 + $0x20] sm:$0xff] }
   0xb   :  { %650 = vmatprep.mubr.msk.f32.mxu1 %vm740_vm1, %v739_v6  ;;  %672 = vmatpush3.msra.mxu0 %v437_v30  ;;  %v595_v59 = vld [vmem:[%s944_s4] ss:$0 sm:$0xff] }
   0xc   :  { %673 = vmatprep.subr.mxu0 %v436_v31  ;;  %v596_v61 = vld [vmem:[%s945_s5] ss:$0 sm:$0xff] }
   0xd   :  { %674 = vmatpush3.msra.mxu0 %v436_v31 }
   0xe   :  { %675 = vmatprep.subr.mxu0 %v435_v32 }
   0xf   :  { %676 = vmatpush3.msra.mxu0 %v435_v32 }
  0x10   :  { %677 = vmatprep.subr.mxu0 %v434_v33 }
  0x11   :  { %678 = vmatpush3.msra.mxu0 %v434_v33 }
  0x12   :  { %679 = vmatprep.subr.mxu0 %v433_v34 }
  0x13   :  { %680 = vmatpush3.msra.mxu0 %v433_v34 }
  0x14   :  { %681 = vmatprep.subr.mxu0 %v432_v35 }
  0x15   :  { %682 = vmatpush3.msra.mxu0 %v432_v35 }
  0x16   :  { %683 = vmatprep.subr.mxu0 %v431_v36 }
  0x17   :  { %684 = vmatpush3.msra.mxu0 %v431_v36 }
  0x18   :  { %685 = vmatprep.subr.mxu0 %v430_v37 }
  0x19   :  { %686 = vmatpush3.msra.mxu0 %v430_v37 }
  0x1a   :  { %687 = vmatprep.subr.mxu0 %v429_v38 }
  0x1b   :  { %688 = vmatpush3.msra.mxu0 %v429_v38 }
  0x1c   :  { %689 = vmatprep.subr.mxu0 %v428_v39 }
  0x1d   :  { %690 = vmatpush3.msra.mxu0 %v428_v39 }
  0x1e   :  { %691 = vmatprep.subr.mxu0 %v427_v40 }
  0x1f   :  { %692 = vmatpush3.msra.mxu0 %v427_v40 }
  0xca   :  { %v647_v7 = vpop.f32.mrf.mxu1 }
  0xcc   :  { %v121_v9 = vpop.f32.mrf.mxu1 }
  0xcd   :  { %649 = vmatpush3.msra.mxu1 %v121_v9  ;;  %v597_v9 = vld [vmem:[%s947_s7] ss:$0 sm:$0xff] }
  0xce   :  { %651 = vmatmul.mubr.msk.f32.vlgmr.msra.gmra.mxu1 %vm132_vm2, %v130_v8  ;;  %653 = vmatprep.subr.mxu1 %v739_v6 }
  0xcf   :  { %654 = vmatpush3.msra.mxu1 %v647_v7  ;;  %655 = vmatprep.mubr.msk.f32.mxu1 %vm740_vm1, %v739_v6  ;;  %v425_v6 = vld [vmem:[%s948_s8 + $0x10] sm:$0xff]  ;;  %v424_v7 = vld [vmem:[%s948_s8 + $0x8] sm:$0xff] }
  0xd0   :  { %658 = vmatprep.subr.mxu1 %v332_v25 }
  0xd2   :  { %656 = vmatmul.mubr.msk.f32.vlgmr.msra.gmra.mxu1 %vm132_vm2, %v130_v8  ;;  %v423_v8 = vld [vmem:[%s948_s8] sm:$0xff] }
  0xd3   :  { %659 = vmatpush3.msra.mxu1 %v332_v25 }
  0xd4   :  { %660 = vmatprep.subr.mxu1 %v331_v26 }
  0xd5   :  { %661 = vmatpush3.msra.mxu1 %v331_v26 }
  0xd6   :  { %662 = vmatprep.subr.mxu1 %v330_v27 }
  0xd7   :  { %663 = vmatpush3.msra.mxu1 %v330_v27 }
  0xd8   :  { %664 = vmatprep.subr.mxu1 %v329_v28 }
  0xd9   :  { %665 = vmatpush3.msra.mxu1 %v329_v28 }
 0x18e   :  { %v202_v11 = vpop.f32.mrf.mxu1 }
 0x18f   :  { %v203_v12 = vadd.f32 %v202_v11, %v131_v10 }
 0x190   :  { %v652_v13 = vpop.f32.mrf.mxu1 }
 0x191   :  { %v835_v14 = vadd.f32 %v203_v12, %v42_v2 }
 0x192   :  { %v272_v15 = vpop.f32.mrf.mxu1 }
 0x193   :  { %v273_v16 = vadd.f32 %v272_v15, %v131_v10  ;;  %v280_v17 = vsel %vm48_vm0, %v835_v14, 0.0  ;;  %v289_v18 = vmul.f32 %v835_v14, %v835_v14 }
 0x194   :  { %281 = vadd.xlane.f32.xlu0 %v280_v17  ;;  %v657_v19 = vpop.f32.mrf.mxu1 }
 0x195   :  { %v841_v20 = vadd.f32 %v273_v16, %v43_v5  ;;  %v291_v21 = vsel %vm48_vm0, %v289_v18, 0.0  ;;  %v426_v5 = vld [vmem:[%s948_s8 + $0x18] sm:$0xff]  ;;  %v600_v16 = vld [vmem:[%s949_s9] ss:$0 sm:$0xff] }
 0x196   :  { %292 = vadd.xlane.f32.xlu1 %v291_v21  ;;  %693 = vmatprep.subr.mxu0 %v426_v5 }
 0x197   :  { %v283_v22 = vsel %vm48_vm0, %v841_v20, 0.0  ;;  %v290_v23 = vmul.f32 %v841_v20, %v841_v20  ;;  %694 = vmatpush3.msra.mxu0 %v426_v5 }
 0x198   :  { %284 = vadd.xlane.f32.xlu0 %v283_v22  ;;  %695 = vmatprep.subr.mxu0 %v425_v6 }
 0x199   :  { %v294_v24 = vsel %vm48_vm0, %v290_v23, 0.0  ;;  %696 = vmatpush3.msra.mxu0 %v425_v6 }
 0x19a   :  { %295 = vadd.xlane.f32.xlu1 %v294_v24  ;;  %697 = vmatprep.subr.mxu0 %v424_v7 }
 0x19b   :  { %698 = vmatpush3.msra.mxu0 %v424_v7 }
 0x19c   :  { %699 = vmatprep.subr.mxu0 %v423_v8 }
 0x19d   :  { %700 = vmatpush3.msra.mxu0 %v423_v8 }
 0x21d   :  { %v282_v41 = vpop.xlane.xlu0 %281 }
 0x21e   :  { %v287_v42 = vmul.f32 0.03125, %v282_v41 }
 0x21f   :  { %v293_v43 = vpop.xlane.xlu1 %292 }
 0x220   :  { %v299_v44 = vmul.f32 %v287_v42, %v287_v42  ;;  %v297_v45 = vmul.f32 0.03125, %v293_v43  ;;  %v305_v57 = vsub.f32 %v835_v14, %v287_v42 }
 0x221   :  { %v285_v46 = vpop.xlane.xlu0 %284 }
 0x222   :  { %v301_v47 = vsub.f32 %v297_v45, %v299_v44  ;;  %v288_v48 = vmul.f32 0.03125, %v285_v46 }
 0x223   :  { %v296_v49 = vpop.xlane.xlu1 %295 }
 0x224   :  { %v303_v50 = vmax.f32 %v301_v47, 0.0  ;;  %v300_v51 = vmul.f32 %v288_v48, %v288_v48  ;;  %v298_v52 = vmul.f32 0.03125, %v296_v49  ;;  %v306_v62 = vsub.f32 %v841_v20, %v288_v48  ;;  %v601_v47 = vld [vmem:[%s950_s10] ss:$0 sm:$0xff]  ;;  %s717_s10 = scalar_lea.vmem %s581_s17, 256 }
 0x225   :  { %p718_p0 = scmp.ne.s32.totalorder %s581_s17, %s717_s10  ;;  %p723_p2 = scmp.lt.s32.totalorder %s717_s10, %s717_s10 }
 0x226   :  { %v307_v53 = vadd.f32 1e-05, %v303_v50  ;;  %v302_v54 = vsub.f32 %v298_v52, %v300_v51  ;;  %v602_v51 = vld [vmem:[%s951_s11] ss:$0 sm:$0xff] }
 0x227   :  { %p724_p3 = por %p723_p2, %p722_p1 }
 0x228   :  { %709 = vrsqrt.f32 %v307_v53  ;;  %v304_v55 = vmax.f32 %v302_v54, 0.0 }
 0x229   :  { %p725_p4 = pnand %p724_p3, %p718_p0 }
 0x22a   :  { %v308_v56 = vadd.f32 1e-05, %v304_v55 }
 0x22c   :  { %711 = vrsqrt.f32 %v308_v56 }
 0x235   :  { %v710_v58 = vpop.eup %709 }
 0x236   :  { %v311_v60 = vmul.f32 %v710_v58, %v305_v57 }
 0x238   :  { %v319_v63 = vmul.f32 %v595_v59, %v311_v60 }
 0x239   :  { %v712_v0 = vpop.eup %711 }
 0x23a   :  { %v312_v1 = vmul.f32 %v712_v0, %v306_v62  ;;  %v327_v2 = vadd.f32 %v596_v61, %v319_v63 }
 0x23c   :  { %v320_v3 = vmul.f32 %v595_v59, %v312_v1  ;;  %666 = vmatprep.mubr.msk.f32.mxu1 %vm48_vm0, %v327_v2 }
 0x23e   :  { %v328_v4 = vadd.f32 %v596_v61, %v320_v3 }
 0x240   :  { %667 = vmatmul.mubr.msk.f32.vlgmr.msra.gmra.mxu1 %vm48_vm0, %v328_v4 }
 0x300   :  { %v668_v10 = vpop.f32.mrf.mxu1 }
 0x301   :  { %v418_v11 = vadd.f32 %v668_v10, %v597_v9 }
 0x302   :  { %v412_v12 = vpop.f32.mrf.mxu1 }
 0x303   :  { %v413_v13 = vadd.f32 %v597_v9, %v412_v12  ;;  %v422_v15 = vmax.f32 %v418_v11, 0.0 }
 0x305   :  { %v421_v14 = vmax.f32 %v413_v13, 0.0 }
 0x307   :  { %701 = vmatprep.mubr.f32.mxu0 %v421_v14 }
 0x308   :  { %702 = vmatmul.mubr.f32.vlgmr.msra.gmra.mxu0 %v422_v15 }
 0x3c8   :  { %v703_v17 = vpop.f32.mrf.mxu0 }
 0x3c9   :  { %v518_v18 = vadd.f32 %v703_v17, %v600_v16 }
 0x3ca   :  { %v512_v19 = vpop.f32.mrf.mxu0 }
 0x3cb   :  { %v522_v20 = vadd.f32 %v518_v18, %v328_v4  ;;  %v513_v21 = vadd.f32 %v600_v16, %v512_v19 }
 0x3cd   :  { %v521_v22 = vadd.f32 %v513_v21, %v327_v2  ;;  %v528_v23 = vsel %vm48_vm0, %v522_v20, 0.0  ;;  %v534_v24 = vmul.f32 %v522_v20, %v522_v20 }
 0x3ce   :  { %529 = vadd.xlane.f32.xlu1 %v528_v23 }
 0x3cf   :  { %v525_v25 = vsel %vm48_vm0, %v521_v22, 0.0  ;;  %v533_v26 = vmul.f32 %v521_v22, %v521_v22  ;;  %v538_v27 = vsel %vm48_vm0, %v534_v24, 0.0 }
 0x3d0   :  { %526 = vadd.xlane.f32.xlu0 %v525_v25 }
 0x3d1   :  { %v535_v28 = vsel %vm48_vm0, %v533_v26, 0.0 }
 0x3d2   :  { %539 = vadd.xlane.f32.xlu1 %v538_v27 }
 0x3d4   :  { %536 = vadd.xlane.f32.xlu0 %v535_v28 }
 0x457   :  { %v530_v29 = vpop.xlane.xlu1 %529 }
 0x458   :  { %v532_v30 = vmul.f32 0.03125, %v530_v29 }
 0x459   :  { %v527_v31 = vpop.xlane.xlu0 %526 }
 0x45a   :  { %v531_v32 = vmul.f32 0.03125, %v527_v31  ;;  %v544_v34 = vmul.f32 %v532_v30, %v532_v30  ;;  %v550_v45 = vsub.f32 %v522_v20, %v532_v30 }
 0x45b   :  { %v540_v33 = vpop.xlane.xlu1 %539 }
 0x45c   :  { %v542_v35 = vmul.f32 0.03125, %v540_v33  ;;  %v543_v37 = vmul.f32 %v531_v32, %v531_v32  ;;  %v549_v48 = vsub.f32 %v521_v22, %v531_v32 }
 0x45d   :  { %v537_v36 = vpop.xlane.xlu0 %536 }
 0x45e   :  { %v546_v38 = vsub.f32 %v542_v35, %v544_v34  ;;  %v541_v39 = vmul.f32 0.03125, %v537_v36 }
 0x460   :  { %v548_v40 = vmax.f32 %v546_v38, 0.0  ;;  %v545_v41 = vsub.f32 %v541_v39, %v543_v37 }
 0x462   :  { %v552_v42 = vadd.f32 1e-05, %v548_v40  ;;  %v547_v43 = vmax.f32 %v545_v41, 0.0 }
 0x464   :  { %713 = vrsqrt.f32 %v552_v42  ;;  %v551_v44 = vadd.f32 1e-05, %v547_v43 }
 0x466   :  { %715 = vrsqrt.f32 %v551_v44 }
 0x471   :  { %v714_v46 = vpop.eup %713 }
 0x472   :  { %v556_v49 = vmul.f32 %v714_v46, %v550_v45 }
 0x473   :  { %v716_v50 = vpop.eup %715 }
 0x474   :  { %v555_v52 = vmul.f32 %v716_v50, %v549_v48  ;;  %v564_v53 = vmul.f32 %v601_v47, %v556_v49 }
 0x476   :  { %v563_v54 = vmul.f32 %v601_v47, %v555_v52  ;;  %v572_v55 = vadd.f32 %v602_v51, %v564_v53 }
 0x478   :  { %v571_v56 = vadd.f32 %v602_v51, %v563_v54  ;;  %574 = vst.msk [vmem:[#allocation2 + $0x8] sm:$0xff] %vm48_vm0, %v572_v55 }
 0x47a   :  { %573 = vst.msk [vmem:[#allocation2] sm:$0xff] %vm48_vm0, %v571_v56 }
 0x47b   :  { %728 = shalt.err (!%p725_p4)
}
 0x47c   :  { %s742_s11 = smov 128   ;;  %s743_s18 = smov 8  }
 0x47d   :  { %586 = dma.vmem_to_hbm [thread:$0]  %s581_s17, 256, %s952_s12, [#allocation3], %s742_s11, %s742_s11, %s743_s18  }
 0x47e   :  { %737 = dma.done.wait [#allocation3], 256  }
 0x47f   :  { %738 = vsyncadd [#allocation3], 4294967040 }
 0x480   :  { %590 = vsyncpa [#allocation3], 1 }

// kernel: tpu_custom_call.1
= control target key start
LH: loop header
LB: loop body
LE: loop exit
PB: predicated region body
PF: predicated region fallthrough
CT: control target
= control target key end

     0   :  { %vm48_vm0 = vcmask 261120   ;;  %s940_s0 = inlined_call_operand.vmem [shape: f32[16,32], index: 0, kind: input, shape index: {}]   ;;  %s941_s1 = inlined_call_operand.vmem [shape: f32[8,8], index: 1, kind: input, shape index: {}]   ;;  %s942_s2 = inlined_call_operand.vmem [shape: f32[8,32], index: 2, kind: input, shape index: {}]   ;;  %s943_s3 = inlined_call_operand.vmem [shape: f32[32,32], index: 3, kind: input, shape index: {}]   ;;  %s944_s4 = inlined_call_operand.vmem [shape: f32[1,32], index: 4, kind: input, shape index: {}]   ;;  %s945_s5 = inlined_call_operand.vmem [shape: f32[1,32], index: 5, kind: input, shape index: {}]   ;;  %s946_s6 = inlined_call_operand.vmem [shape: f32[32,128], index: 6, kind: input, shape index: {}]   ;;  %s947_s7 = inlined_call_operand.vmem [shape: f32[1,128], index: 7, kind: input, shape index: {}]   ;;  %s948_s8 = inlined_call_operand.vmem [shape: f32[128,32], index: 8, kind: input, shape index: {}]   ;;  %s949_s9 = inlined_call_operand.vmem [shape: f32[1,32], index: 9, kind: input, shape index: {}]   ;;  %s950_s10 = inlined_call_operand.vmem [shape: f32[1,32], index: 10, kind: input, shape index: {}]   ;;  %s951_s11 = inlined_call_operand.vmem [shape: f32[1,32], index: 11, kind: input, shape index: {}]   ;;  %s952_s12 = inlined_call_operand.hbm [shape: f32[16,32], index: 12, kind: output, shape index: {}]  }
   0x1   :  { %v47_v0 = vld [vmem:[%s943_s3 + $0x18] sm:$0xff]  ;;  %v46_v1 = vld [vmem:[%s943_s3 + $0x10] sm:$0xff]  ;;  %v42_v2 = vld [vmem:[%s940_s0] sm:$0xff] }
   0x2   :  { %637 = vmatprep.subr.mxu1 %v47_v0  ;;  %v45_v3 = vld [vmem:[%s943_s3 + $0x8] sm:$0xff]  ;;  %645 = vmatprep.mubr.msk.f32.mxu1 %vm48_vm0, %v42_v2 }
   0x3   :  { %638 = vmatpush3.msra.mxu1 %v47_v0 }
   0x4   :  { %17 = vsyncpa [#allocation3], 0  ;;  %639 = vmatprep.subr.mxu1 %v46_v1  ;;  %v44_v4 = vld [vmem:[%s943_s3] sm:$0xff]  ;;  %v43_v5 = vld [vmem:[%s940_s0 + $0x8] sm:$0xff]  ;;  %v739_v6 = vmov 0.0   ;;  %vm740_vm1 = vmmov 0  }
   0x5   :  { %640 = vmatpush3.msra.mxu1 %v46_v1  ;;  %v130_v8 = vld [vmem:[%s941_s1] sm:$0xff]  ;;  %vm132_vm2 = vcmask 64512   ;;  %v332_v25 = vld [vmem:[%s946_s6 + $0x18] sm:$0xff]  ;;  %v331_v26 = vld [vmem:[%s946_s6 + $0x10] sm:$0xff] }
   0x6   :  { %641 = vmatprep.subr.mxu1 %v45_v3  ;;  %v131_v10 = vld [vmem:[%s942_s2] sm:$0xff]  ;;  %v330_v27 = vld [vmem:[%s946_s6 + $0x8] sm:$0xff]  ;;  %v438_v29 = vld [vmem:[%s948_s8 + $0x78] sm:$0xff]  ;;  %s741_s2 = smov [#allocation2]  }
   0x7   :  { %642 = vmatpush3.msra.mxu1 %v45_v3  ;;  %v329_v28 = vld [vmem:[%s946_s6] sm:$0xff]  ;;  %v437_v30 = vld [vmem:[%s948_s8 + $0x70] sm:$0xff]  ;;  %669 = vmatprep.subr.mxu0 %v438_v29  ;;  %v436_v31 = vld [vmem:[%s948_s8 + $0x68] sm:$0xff]  ;;  %s580_s17 = sshll.u32 %s741_s2, 4  ;;  %s581_s17 = int_to_ptr.vmem [resolvable:$true] %s580_s17 }
   0x8   :  { %643 = vmatprep.subr.mxu1 %v44_v4  ;;  %670 = vmatpush3.msra.mxu0 %v438_v29  ;;  %v435_v32 = vld [vmem:[%s948_s8 + $0x60] sm:$0xff]  ;;  %v434_v33 = vld [vmem:[%s948_s8 + $0x58] sm:$0xff]  ;;  %v433_v34 = vld [vmem:[%s948_s8 + $0x50] sm:$0xff]  ;;  %p722_p1 = scmp.lt.s32.totalorder %s581_s17, %s581_s17 }
   0x9   :  { %644 = vmatpush3.msra.mxu1 %v44_v4  ;;  %671 = vmatprep.subr.mxu0 %v437_v30  ;;  %v432_v35 = vld [vmem:[%s948_s8 + $0x48] sm:$0xff]  ;;  %v431_v36 = vld [vmem:[%s948_s8 + $0x40] sm:$0xff]  ;;  %v430_v37 = vld [vmem:[%s948_s8 + $0x38] sm:$0xff] }
   0xa   :  { %646 = vmatmul.mubr.msk.f32.vlgmr.msra.gmra.mxu1 %vm48_vm0, %v43_v5  ;;  %648 = vmatprep.subr.mxu1 %v739_v6  ;;  %v429_v38 = vld [vmem:[%s948_s8 + $0x30] sm:$0xff]  ;;  %v428_v39 = vld [vmem:[%s948_s8 + $0x28] sm:$0xff]  ;;  %v427_v40 = vld [vmem:[%s948_s8 + $0x20] sm:$0xff] }
   0xb   :  { %650 = vmatprep.mubr.msk.f32.mxu1 %vm740_vm1, %v739_v6  ;;  %672 = vmatpush3.msra.mxu0 %v437_v30  ;;  %v595_v59 = vld [vmem:[%s944_s4] ss:$0 sm:$0xff] }
   0xc   :  { %673 = vmatprep.subr.mxu0 %v436_v31  ;;  %v596_v61 = vld [vmem:[%s945_s5] ss:$0 sm:$0xff] }
   0xd   :  { %674 = vmatpush3.msra.mxu0 %v436_v31 }
   0xe   :  { %675 = vmatprep.subr.mxu0 %v435_v32 }
   0xf   :  { %676 = vmatpush3.msra.mxu0 %v435_v32 }
  0x10   :  { %677 = vmatprep.subr.mxu0 %v434_v33 }
  0x11   :  { %678 = vmatpush3.msra.mxu0 %v434_v33 }
  0x12   :  { %679 = vmatprep.subr.mxu0 %v433_v34 }
  0x13   :  { %680 = vmatpush3.msra.mxu0 %v433_v34 }
  0x14   :  { %681 = vmatprep.subr.mxu0 %v432_v35 }
  0x15   :  { %682 = vmatpush3.msra.mxu0 %v432_v35 }
  0x16   :  { %683 = vmatprep.subr.mxu0 %v431_v36 }
  0x17   :  { %684 = vmatpush3.msra.mxu0 %v431_v36 }
  0x18   :  { %685 = vmatprep.subr.mxu0 %v430_v37 }
  0x19   :  { %686 = vmatpush3.msra.mxu0 %v430_v37 }
  0x1a   :  { %687 = vmatprep.subr.mxu0 %v429_v38 }
  0x1b   :  { %688 = vmatpush3.msra.mxu0 %v429_v38 }
  0x1c   :  { %689 = vmatprep.subr.mxu0 %v428_v39 }
  0x1d   :  { %690 = vmatpush3.msra.mxu0 %v428_v39 }
  0x1e   :  { %691 = vmatprep.subr.mxu0 %v427_v40 }
  0x1f   :  { %692 = vmatpush3.msra.mxu0 %v427_v40 }
  0xca   :  { %v647_v7 = vpop.f32.mrf.mxu1 }
  0xcc   :  { %v121_v9 = vpop.f32.mrf.mxu1 }
  0xcd   :  { %649 = vmatpush3.msra.mxu1 %v121_v9  ;;  %v597_v9 = vld [vmem:[%s947_s7] ss:$0 sm:$0xff] }
  0xce   :  { %651 = vmatmul.mubr.msk.f32.vlgmr.msra.gmra.mxu1 %vm132_vm2, %v130_v8  ;;  %653 = vmatprep.subr.mxu1 %v739_v6 }
  0xcf   :  { %654 = vmatpush3.msra.mxu1 %v647_v7  ;;  %655 = vmatprep.mubr.msk.f32.mxu1 %vm740_vm1, %v739_v6  ;;  %v425_v6 = vld [vmem:[%s948_s8 + $0x10] sm:$0xff]  ;;  %v424_v7 = vld [vmem:[%s948_s8 + $0x8] sm:$0xff] }
  0xd0   :  { %658 = vmatprep.subr.mxu1 %v332_v25 }
  0xd2   :  { %656 = vmatmul.mubr.msk.f32.vlgmr.msra.gmra.mxu1 %vm132_vm2, %v130_v8  ;;  %v423_v8 = vld [vmem:[%s948_s8] sm:$0xff] }
  0xd3   :  { %659 = vmatpush3.msra.mxu1 %v332_v25 }
  0xd4   :  { %660 = vmatprep.subr.mxu1 %v331_v26 }
  0xd5   :  { %661 = vmatpush3.msra.mxu1 %v331_v26 }
  0xd6   :  { %662 = vmatprep.subr.mxu1 %v330_v27 }
  0xd7   :  { %663 = vmatpush3.msra.mxu1 %v330_v27 }
  0xd8   :  { %664 = vmatprep.subr.mxu1 %v329_v28 }
  0xd9   :  { %665 = vmatpush3.msra.mxu1 %v329_v28 }
 0x18e   :  { %v202_v11 = vpop.f32.mrf.mxu1 }
 0x18f   :  { %v203_v12 = vadd.f32 %v202_v11, %v131_v10 }
 0x190   :  { %v652_v13 = vpop.f32.mrf.mxu1 }
 0x191   :  { %v835_v14 = vadd.f32 %v203_v12, %v42_v2 }
 0x192   :  { %v272_v15 = vpop.f32.mrf.mxu1 }
 0x193   :  { %v273_v16 = vadd.f32 %v272_v15, %v131_v10  ;;  %v280_v17 = vsel %vm48_vm0, %v835_v14, 0.0  ;;  %v289_v18 = vmul.f32 %v835_v14, %v835_v14 }
 0x194   :  { %281 = vadd.xlane.f32.xlu0 %v280_v17  ;;  %v657_v19 = vpop.f32.mrf.mxu1 }
 0x195   :  { %v841_v20 = vadd.f32 %v273_v16, %v43_v5  ;;  %v291_v21 = vsel %vm48_vm0, %v289_v18, 0.0  ;;  %v426_v5 = vld [vmem:[%s948_s8 + $0x18] sm:$0xff]  ;;  %v600_v16 = vld [vmem:[%s949_s9] ss:$0 sm:$0xff] }
 0x196   :  { %292 = vadd.xlane.f32.xlu1 %v291_v21  ;;  %693 = vmatprep.subr.mxu0 %v426_v5 }
 0x197   :  { %v283_v22 = vsel %vm48_vm0, %v841_v20, 0.0  ;;  %v290_v23 = vmul.f32 %v841_v20, %v841_v20  ;;  %694 = vmatpush3.msra.mxu0 %v426_v5 }
 0x198   :  { %284 = vadd.xlane.f32.xlu0 %v283_v22  ;;  %695 = vmatprep.subr.mxu0 %v425_v6 }
 0x199   :  { %v294_v24 = vsel %vm48_vm0, %v290_v23, 0.0  ;;  %696 = vmatpush3.msra.mxu0 %v425_v6 }
 0x19a   :  { %295 = vadd.xlane.f32.xlu1 %v294_v24  ;;  %697 = vmatprep.subr.mxu0 %v424_v7 }
 0x19b   :  { %698 = vmatpush3.msra.mxu0 %v424_v7 }
 0x19c   :  { %699 = vmatprep.subr.mxu0 %v423_v8 }
 0x19d   :  { %700 = vmatpush3.msra.mxu0 %v423_v8 }
 0x21d   :  { %v282_v41 = vpop.xlane.xlu0 %281 }
 0x21e   :  { %v287_v42 = vmul.f32 0.03125, %v282_v41 }
 0x21f   :  { %v293_v43 = vpop.xlane.xlu1 %292 }
 0x220   :  { %v299_v44 = vmul.f32 %v287_v42, %v287_v42  ;;  %v297_v45 = vmul.f32 0.03125, %v293_v43  ;;  %v305_v57 = vsub.f32 %v835_v14, %v287_v42 }
 0x221   :  { %v285_v46 = vpop.xlane.xlu0 %284 }
 0x222   :  { %v301_v47 = vsub.f32 %v297_v45, %v299_v44  ;;  %v288_v48 = vmul.f32 0.03125, %v285_v46 }
 0x223   :  { %v296_v49 = vpop.xlane.xlu1 %295 }
 0x224   :  { %v303_v50 = vmax.f32 %v301_v47, 0.0  ;;  %v300_v51 = vmul.f32 %v288_v48, %v288_v48  ;;  %v298_v52 = vmul.f32 0.03125, %v296_v49  ;;  %v306_v62 = vsub.f32 %v841_v20, %v288_v48  ;;  %v601_v47 = vld [vmem:[%s950_s10] ss:$0 sm:$0xff]  ;;  %s717_s10 = scalar_lea.vmem %s581_s17, 256 }
 0x225   :  { %p718_p0 = scmp.ne.s32.totalorder %s581_s17, %s717_s10  ;;  %p723_p2 = scmp.lt.s32.totalorder %s717_s10, %s717_s10 }
 0x226   :  { %v307_v53 = vadd.f32 1e-05, %v303_v50  ;;  %v302_v54 = vsub.f32 %v298_v52, %v300_v51  ;;  %v602_v51 = vld [vmem:[%s951_s11] ss:$0 sm:$0xff] }
 0x227   :  { %p724_p3 = por %p723_p2, %p722_p1 }
 0x228   :  { %709 = vrsqrt.f32 %v307_v53  ;;  %v304_v55 = vmax.f32 %v302_v54, 0.0 }
 0x229   :  { %p725_p4 = pnand %p724_p3, %p718_p0 }
 0x22a   :  { %v308_v56 = vadd.f32 1e-05, %v304_v55 }
 0x22c   :  { %711 = vrsqrt.f32 %v308_v56 }
 0x235   :  { %v710_v58 = vpop.eup %709 }
 0x236   :  { %v311_v60 = vmul.f32 %v710_v58, %v305_v57 }
 0x238   :  { %v319_v63 = vmul.f32 %v595_v59, %v311_v60 }
 0x239   :  { %v712_v0 = vpop.eup %711 }
 0x23a   :  { %v312_v1 = vmul.f32 %v712_v0, %v306_v62  ;;  %v327_v2 = vadd.f32 %v596_v61, %v319_v63 }
 0x23c   :  { %v320_v3 = vmul.f32 %v595_v59, %v312_v1  ;;  %666 = vmatprep.mubr.msk.f32.mxu1 %vm48_vm0, %v327_v2 }
 0x23e   :  { %v328_v4 = vadd.f32 %v596_v61, %v320_v3 }
 0x240   :  { %667 = vmatmul.mubr.msk.f32.vlgmr.msra.gmra.mxu1 %vm48_vm0, %v328_v4 }
 0x300   :  { %v668_v10 = vpop.f32.mrf.mxu1 }
 0x301   :  { %v418_v11 = vadd.f32 %v668_v10, %v597_v9 }
 0x302   :  { %v412_v12 = vpop.f32.mrf.mxu1 }
 0x303   :  { %v413_v13 = vadd.f32 %v597_v9, %v412_v12  ;;  %v422_v15 = vmax.f32 %v418_v11, 0.0 }
 0x305   :  { %v421_v14 = vmax.f32 %v413_v13, 0.0 }
 0x307   :  { %701 = vmatprep.mubr.f32.mxu0 %v421_v14 }
 0x308   :  { %702 = vmatmul.mubr.f32.vlgmr.msra.gmra.mxu0 %v422_v15 }
 0x3c8   :  { %v703_v17 = vpop.f32.mrf.mxu0 }
 0x3c9   :  { %v518_v18 = vadd.f32 %v703_v17, %v600_v16 }
 0x3ca   :  { %v512_v19 = vpop.f32.mrf.mxu0 }
 0x3cb   :  { %v522_v20 = vadd.f32 %v518_v18, %v328_v4  ;;  %v513_v21 = vadd.f32 %v600_v16, %v512_v19 }
 0x3cd   :  { %v521_v22 = vadd.f32 %v513_v21, %v327_v2  ;;  %v528_v23 = vsel %vm48_vm0, %v522_v20, 0.0  ;;  %v534_v24 = vmul.f32 %v522_v20, %v522_v20 }
 0x3ce   :  { %529 = vadd.xlane.f32.xlu1 %v528_v23 }
 0x3cf   :  { %v525_v25 = vsel %vm48_vm0, %v521_v22, 0.0  ;;  %v533_v26 = vmul.f32 %v521_v22, %v521_v22  ;;  %v538_v27 = vsel %vm48_vm0, %v534_v24, 0.0 }
 0x3d0   :  { %526 = vadd.xlane.f32.xlu0 %v525_v25 }
 0x3d1   :  { %v535_v28 = vsel %vm48_vm0, %v533_v26, 0.0 }
 0x3d2   :  { %539 = vadd.xlane.f32.xlu1 %v538_v27 }
 0x3d4   :  { %536 = vadd.xlane.f32.xlu0 %v535_v28 }
 0x457   :  { %v530_v29 = vpop.xlane.xlu1 %529 }
 0x458   :  { %v532_v30 = vmul.f32 0.03125, %v530_v29 }
 0x459   :  { %v527_v31 = vpop.xlane.xlu0 %526 }
 0x45a   :  { %v531_v32 = vmul.f32 0.03125, %v527_v31  ;;  %v544_v34 = vmul.f32 %v532_v30, %v532_v30  ;;  %v550_v45 = vsub.f32 %v522_v20, %v532_v30 }
 0x45b   :  { %v540_v33 = vpop.xlane.xlu1 %539 }
 0x45c   :  { %v542_v35 = vmul.f32 0.03125, %v540_v33  ;;  %v543_v37 = vmul.f32 %v531_v32, %v531_v32  ;;  %v549_v48 = vsub.f32 %v521_v22, %v531_v32 }
 0x45d   :  { %v537_v36 = vpop.xlane.xlu0 %536 }
 0x45e   :  { %v546_v38 = vsub.f32 %v542_v35, %v544_v34  ;;  %v541_v39 = vmul.f32 0.03125, %v537_v36 }
 0x460   :  { %v548_v40 = vmax.f32 %v546_v38, 0.0  ;;  %v545_v41 = vsub.f32 %v541_v39, %v543_v37 }
 0x462   :  { %v552_v42 = vadd.f32 1e-05, %v548_v40  ;;  %v547_v43 = vmax.f32 %v545_v41, 0.0 }
 0x464   :  { %713 = vrsqrt.f32 %v552_v42  ;;  %v551_v44 = vadd.f32 1e-05, %v547_v43 }
 0x466   :  { %715 = vrsqrt.f32 %v551_v44 }
 0x471   :  { %v714_v46 = vpop.eup %713 }
 0x472   :  { %v556_v49 = vmul.f32 %v714_v46, %v550_v45 }
 0x473   :  { %v716_v50 = vpop.eup %715 }
 0x474   :  { %v555_v52 = vmul.f32 %v716_v50, %v549_v48  ;;  %v564_v53 = vmul.f32 %v601_v47, %v556_v49 }
 0x476   :  { %v563_v54 = vmul.f32 %v601_v47, %v555_v52  ;;  %v572_v55 = vadd.f32 %v602_v51, %v564_v53 }
 0x478   :  { %v571_v56 = vadd.f32 %v602_v51, %v563_v54  ;;  %574 = vst.msk [vmem:[#allocation2 + $0x8] sm:$0xff] %vm48_vm0, %v572_v55 }
 0x47a   :  { %573 = vst.msk [vmem:[#allocation2] sm:$0xff] %vm48_vm0, %v571_v56 }
 0x47b   :  { %728 = shalt.err (!%p725_p4)
}
 0x47c   :  { %s742_s11 = smov 128   ;;  %s743_s18 = smov 8  }
 0x47d   :  { %586 = dma.vmem_to_hbm [thread:$0]  %s581_s17, 256, %s952_s12, [#allocation3], %s742_s11, %s742_s11, %s743_s18  }
 0x47e   :  { %737 = dma.done.wait [#allocation3], 256  }
 0x47f   :  { %738 = vsyncadd [#allocation3], 4294967040 }
 0x480   :  { %590 = vsyncpa [#allocation3], 1 }

</bundles_post_ra>
